<compile_context>
chip_gen: v6e
topology: v6e:2x2x1
jax: 0.10.0
libtpu: 0.0.40
codegen_flags: <defaults>
</compile_context>

<pallas_src>
from functools import partial

import jax
import jax.numpy as jnp
from jax import lax
from jax.experimental import pallas as pl
from jax.experimental.pallas import tpu as pltpu


def _mix_u32(z):
    """Cheap 32-bit integer mixer (murmur/lowbias-style finalizer); pure VPU ops."""
    z = z ^ (z >> 16)
    z = z * jnp.uint32(0x7FEB352D)
    z = z ^ (z >> 15)
    z = z * jnp.uint32(0x846CA68B)
    z = z ^ (z >> 16)
    return z


def _rnn_dropout_kernel(seed_ref, x_ref, o_ref, *, p):
    # Grid: (batch-tile, seq-tile). Block refs are (tB, tS, H).
    tB, _, H = x_ref.shape
    keep = 1.0 - p

    # Per-(batch, hidden) mask.  Depends only on (seed, global batch index,
    # hidden index) — NOT on the seq-tile index — so every seq tile of a batch
    # row re-derives the identical mask, matching the PyTorch (B, 1, H)
    # broadcast over the sequence axis.
    seed = lax.convert_element_type(seed_ref[0], jnp.uint32)
    b_base = lax.convert_element_type(pl.program_id(0) * tB, jnp.uint32)

    b_idx = lax.broadcasted_iota(jnp.uint32, (tB, 1, H), 0) + b_base   # global batch id
    h_idx = lax.broadcasted_iota(jnp.uint32, (tB, 1, H), 2)            # hidden id
    z = _mix_u32(h_idx * jnp.uint32(0x9E3779B1)
                 + b_idx * jnp.uint32(0x85EBCA77)
                 + seed)

    # Bernoulli(keep) via integer threshold: keep element iff hash < keep * 2**32.
    thr = jnp.uint32(min(int(keep * 2.0 ** 32), 2 ** 32 - 1))
    mask = jnp.where(z < thr, jnp.float32(1.0 / keep), jnp.float32(0.0))
    mask = mask.astype(x_ref.dtype)                                    # (tB, 1, H)

    # Sublane-broadcast multiply: (tB, tS, H) * (tB, 1, H), lane-dense store.
    o_ref[...] = x_ref[...] * mask


def _choose_tiles(B, S, H, dtype, target_bytes=2 * 1024 * 1024):
    """Pick (tB, tS) so each block moves ~2 MiB: big enough to amortize the
    ~0.35 us/step pipeline overhead (this op is pure HBM bandwidth), small
    enough that (in + out) x double-buffers stays well under the scoped-VMEM
    budget on every generation (v5e/v6e/v7x)."""
    itemsize = jnp.dtype(dtype).itemsize
    sub = {4: 8, 2: 16, 1: 32}.get(itemsize, 8)     # sublane packing requirement
    row_bytes = max(H * itemsize, 1)                # one (1, 1, H) row
    seq_bytes = S * row_bytes                       # one full (1, S, H) slab

    if seq_bytes >= target_bytes:
        # A single batch row is already big: one row per step, tile the seq axis.
        tB = 1
        tS = max(sub, target_bytes // row_bytes)
        tS = max(sub, (tS // sub) * sub)            # keep (8,128)-tile alignment
        if tS >= S:
            tS = S
    else:
        # Whole sequence per step; pack multiple batch rows to hit the target.
        tS = S
        tB = max(1, min(B, target_bytes // seq_bytes))
    return tB, tS


def rnn_dropout(x, seed, p=0.5, training=True):
    """Pallas implementation of RNNDropout.forward. x: (B, S, H)."""
    if not training or p == 0.0:
        return x
    B, S, H = x.shape
    # NOTE: best performance when H is a multiple of 128 (lane-dense stores);
    # odd fastai sizes (e.g. 400/1150) still work but use masked partial stores.
    tB, tS = _choose_tiles(B, S, H, x.dtype)
    grid = (pl.cdiv(B, tB), pl.cdiv(S, tS))
    kernel = partial(_rnn_dropout_kernel, p=float(p))
    seed_arr = jnp.asarray([seed], dtype=jnp.int32)
    return pl.pallas_call(
        kernel,
        out_shape=jax.ShapeDtypeStruct((B, S, H), x.dtype),
        grid_spec=pltpu.PrefetchScalarGridSpec(
            num_scalar_prefetch=1,
            grid=grid,
            in_specs=[pl.BlockSpec((tB, tS, H), lambda b, s, seed: (b, s, 0))],
            out_specs=pl.BlockSpec((tB, tS, H), lambda b, s, seed: (b, s, 0)),
        ),
        compiler_params=pltpu.CompilerParams(
            # Mask is recomputed deterministically per tile (no stateful PRNG),
            # so both axes are safe to shard across TensorCores (v7x megacore).
            dimension_semantics=("parallel", "parallel"),
            vmem_limit_bytes=32 * 1024 * 1024,
        ),
    )(seed_arr, x)


if __name__ == "__main__":
    p = 0.5
    B, S, H = 2, 8, 128  # batch, seq, hidden

    key = jax.random.PRNGKey(0)
    x = jax.random.normal(key, (B, S, H), dtype=jnp.float32)

    out = rnn_dropout(x, seed=0, p=p, training=True)
    out = jax.block_until_ready(out)

    # sanity: every output element is either 0 (dropped) or x / (1 - p) (kept)
    scaled = x / (1.0 - p)
    ok_values = jnp.all((jnp.abs(out) < 1e-6) | (jnp.abs(out - scaled) < 1e-4))
    # sanity: mask is constant along the seq axis (same keep/drop for all timesteps)
    kept = jnp.abs(out) > 1e-6
    ok_seq = jnp.all(kept == kept[:, :1, :])
    # sanity: mask differs between batch rows (not one shared mask) and is
    # neither degenerate all-keep nor all-drop
    frac = jnp.mean(kept[:, 0, :].astype(jnp.float32))
    ok_frac = (frac > 0.1) & (frac < 0.9)
    ok_batch = jnp.any(kept[0, 0, :] != kept[1, 0, :])
    # eval mode / p == 0 is identity
    ok_eval = jnp.array_equal(rnn_dropout(x, seed=0, p=p, training=False), x)

    # also exercise a larger, tiled shape (multiple batch rows per block)
    x2 = jax.random.normal(jax.random.PRNGKey(1), (16, 64, 256), dtype=jnp.float32)
    out2 = jax.block_until_ready(rnn_dropout(x2, seed=3, p=0.3, training=True))
    kept2 = jnp.abs(out2) > 1e-6
    ok_big = jnp.all(kept2 == kept2[:, :1, :]) and out2.shape == x2.shape

    assert bool(ok_values) and bool(ok_seq) and bool(ok_frac)
    assert bool(ok_batch) and bool(ok_eval) and bool(ok_big)
    assert out.shape == x.shape and out.dtype == x.dtype
    print("KERNEL_OK")
</pallas_src>

<mosaic_0001>
module attributes {stable_mosaic.version = 11 : i64} {
  func.func @_rnn_dropout_kernel(%arg0: i32, %arg1: i32, %arg2: memref<1xi32, #tpu.memory_space<smem>>, %arg3: memref<2x8x128xf32, #tpu.memory_space<vmem>>, %arg4: memref<2x8x128xf32, #tpu.memory_space<vmem>>) attributes {dimension_semantics = [#tpu.dimension_semantics<parallel>, #tpu.dimension_semantics<parallel>], iteration_bounds = array<i64: 1, 1>, scalar_prefetch = 1 : i64, scratch_operands = 0 : i64, tpu.core_type = #tpu.core_type<tc>, window_params = [{transform_indices = @transform_0, window_bounds = array<i64: 2, 8, 128>}, {transform_indices = @transform_1, window_bounds = array<i64: 2, 8, 128>}]} {
    %c0 = arith.constant 0 : index
    %0 = memref.load %arg2[%c0] : memref<1xi32, #tpu.memory_space<smem>>
    %c2_i32 = arith.constant 2 : i32
    %1 = arith.muli %arg0, %c2_i32 : i32
    %2 = tpu.iota {dimensions = array<i32: 0>} : vector<2x1x128xi32>
    %3 = vector.broadcast %1 : i32 to vector<2x1x128xi32>
    %4 = arith.addi %2, %3 : vector<2x1x128xi32>
    %5 = tpu.iota {dimensions = array<i32: 2>} : vector<2x1x128xi32>
    %c-1640531535_i32 = arith.constant -1640531535 : i32
    %6 = vector.broadcast %c-1640531535_i32 : i32 to vector<2x1x128xi32>
    %7 = arith.muli %5, %6 : vector<2x1x128xi32>
    %c-2048144777_i32 = arith.constant -2048144777 : i32
    %8 = vector.broadcast %c-2048144777_i32 : i32 to vector<2x1x128xi32>
    %9 = arith.muli %4, %8 : vector<2x1x128xi32>
    %10 = arith.addi %7, %9 : vector<2x1x128xi32>
    %11 = vector.broadcast %0 : i32 to vector<2x1x128xi32>
    %12 = arith.addi %10, %11 : vector<2x1x128xi32>
    %c16_i32 = arith.constant 16 : i32
    %13 = vector.broadcast %c16_i32 : i32 to vector<2x1x128xi32>
    %14 = arith.shrui %12, %13 : vector<2x1x128xi32>
    %15 = arith.xori %12, %14 : vector<2x1x128xi32>
    %c2146121005_i32 = arith.constant 2146121005 : i32
    %16 = vector.broadcast %c2146121005_i32 : i32 to vector<2x1x128xi32>
    %17 = arith.muli %15, %16 : vector<2x1x128xi32>
    %c15_i32 = arith.constant 15 : i32
    %18 = vector.broadcast %c15_i32 : i32 to vector<2x1x128xi32>
    %19 = arith.shrui %17, %18 : vector<2x1x128xi32>
    %20 = arith.xori %17, %19 : vector<2x1x128xi32>
    %c-2073254261_i32 = arith.constant -2073254261 : i32
    %21 = vector.broadcast %c-2073254261_i32 : i32 to vector<2x1x128xi32>
    %22 = arith.muli %20, %21 : vector<2x1x128xi32>
    %c16_i32_0 = arith.constant 16 : i32
    %23 = vector.broadcast %c16_i32_0 : i32 to vector<2x1x128xi32>
    %24 = arith.shrui %22, %23 : vector<2x1x128xi32>
    %25 = arith.xori %22, %24 : vector<2x1x128xi32>
    %c-2147483648_i32 = arith.constant -2147483648 : i32
    %26 = vector.broadcast %c-2147483648_i32 : i32 to vector<2x1x128xi32>
    %27 = arith.cmpi ult, %25, %26 : vector<2x1x128xi32>
    %cst = arith.constant 2.000000e+00 : f32
    %cst_1 = arith.constant 0.000000e+00 : f32
    %28 = vector.broadcast %cst : f32 to vector<2x1x128xf32>
    %29 = vector.broadcast %cst_1 : f32 to vector<2x1x128xf32>
    %30 = arith.select %27, %28, %29 : vector<2x1x128xi1>, vector<2x1x128xf32>
    %c0_2 = arith.constant 0 : index
    %c0_3 = arith.constant 0 : index
    %c0_4 = arith.constant 0 : index
    %31 = vector.load %arg3[%c0_2, %c0_3, %c0_4] : memref<2x8x128xf32, #tpu.memory_space<vmem>>, vector<2x8x128xf32>
    %32 = vector.broadcast %30 : vector<2x1x128xf32> to vector<2x8x128xf32>
    %33 = arith.mulf %31, %32 : vector<2x8x128xf32>
    %c0_5 = arith.constant 0 : index
    %c0_6 = arith.constant 0 : index
    %c0_7 = arith.constant 0 : index
    %34 = vector.load %arg4[%c0_5, %c0_6, %c0_7] : memref<2x8x128xf32, #tpu.memory_space<vmem>>, vector<2x8x128xf32>
    tpu.vector_store %arg4[%c0_5, %c0_6, %c0_7], %33 {strides = array<i32>} : memref<2x8x128xf32, #tpu.memory_space<vmem>>, vector<2x8x128xf32>,
    return
  }
  func.func @transform_0(%arg0: i32, %arg1: i32, %arg2: memref<1xi32, #tpu.memory_space<smem>>) -> (i32, i32, i32) {
    %c0_i32 = arith.constant 0 : i32
    %c0_i32_0 = arith.constant 0 : i32
    return %arg0, %arg1, %c0_i32 : i32, i32, i32
  }
  func.func @transform_1(%arg0: i32, %arg1: i32, %arg2: memref<1xi32, #tpu.memory_space<smem>>) -> (i32, i32, i32) {
    %c0_i32 = arith.constant 0 : i32
    %c0_i32_0 = arith.constant 0 : i32
    return %arg0, %arg1, %c0_i32 : i32, i32, i32
  }
}

</mosaic_0001>

<bundles_post_ra>
// kernel: tpu_custom_call.1
= control target key start
LH: loop header
LB: loop body
LE: loop exit
PB: predicated region body
PF: predicated region fallthrough
CT: control target
= control target key end

     0   :  { %8 = vsyncpa [#allocation5], 0  ;;  %s166_s0 = inlined_call_operand.<no memory space> [shape: s32[1], index: 0, kind: input, shape index: {}]   ;;  %s167_s1 = inlined_call_operand.hbm [shape: f32[2,8,128], index: 1, kind: input, shape index: {}]   ;;  %s168_s2 = inlined_call_operand.hbm [shape: f32[2,8,128], index: 2, kind: output, shape index: {}]  }
   0x1   :  { %9 = vsyncpa [#allocation6], 0  ;;  %s131_s9 = smov [#allocation4]  }
   0x2   :  { %s15_s10 = sshll.u32 %s131_s9, 4  ;;  %s16_s10 = int_to_ptr.vmem [resolvable:$true] %s15_s10 }
   0x3   :  { %s95_s11 = scalar_lea.vmem %s16_s10, 256  ;;  %p100_p1 = scmp.lt.s32.totalorder %s16_s10, %s16_s10 }
   0x4   :  { %p96_p0 = scmp.ne.s32.totalorder %s16_s10, %s95_s11  ;;  %p101_p2 = scmp.lt.s32.totalorder %s95_s11, %s95_s11 }
   0x6   :  { %p102_p3 = por %p101_p2, %p100_p1 }
   0x8   :  { %p103_p4 = pnand %p102_p3, %p96_p0 }
   0xa   :  { %106 = shalt.err (!%p103_p4)
}
   0xb   :  { %s132_s12 = smov 128   ;;  %s133_s13 = smov 8  }
   0xc   :  { %21 = dma.hbm_to_vmem [thread:$0]  %s167_s1, 256, %s16_s10, [#allocation5], %s132_s12, %s132_s12, %s133_s13  }
   0xd   :  { %127 = dma.done.wait [#allocation5], 256  }
   0xe   :  { %128 = vsyncadd [#allocation5], 4294967040  ;;  %v29_v0 = vlaneseq  ;;  %v36_v2 = vstv %s166_s0  ;;  %v59_v22 = vld [vmem:[#allocation4] sm:$0xff]  ;;  %v134_v24 = vmov 0.0   ;;  %v60_v26 = vld [vmem:[#allocation4 + $0x8] sm:$0xff]  ;;  %s135_s0 = smov [#allocation7]  }
   0xf   :  { %s70_s1 = sshll.u32 %s135_s0, 4  ;;  %s71_s1 = int_to_ptr.vmem [resolvable:$true] %s70_s1 }
  0x10   :  { %v30_v1 = vand.u32 127, %v29_v0  ;;  %s107_s18 = scalar_lea.vmem %s71_s1, 256  ;;  %p112_p6 = scmp.lt.s32.totalorder %s71_s1, %s71_s1 }
  0x11   :  { %p108_p5 = scmp.ne.s32.totalorder %s71_s1, %s107_s18  ;;  %p113_p7 = scmp.lt.s32.totalorder %s107_s18, %s107_s18 }
  0x12   :  { %v31_v3 = vmul.u32 2654435761, %v30_v1 }
  0x13   :  { %p114_p8 = por %p113_p7, %p112_p6 }
  0x14   :  { %v37_v4 = vadd.s32 %v36_v2, %v31_v3  ;;  %v35_v5 = vadd.s32 2246822519, %v31_v3 }
  0x15   :  { %p115_p9 = pnand %p114_p8, %p108_p5 }
  0x16   :  { %v39_v6 = vshrl.u32 %v37_v4, 16  ;;  %v38_v7 = vadd.s32 %v36_v2, %v35_v5 }
  0x18   :  { %v41_v8 = vxor.u32 %v39_v6, %v37_v4  ;;  %v40_v9 = vshrl.u32 %v38_v7, 16 }
  0x1a   :  { %v43_v10 = vmul.u32 2146121005, %v41_v8  ;;  %v42_v11 = vxor.u32 %v40_v9, %v38_v7 }
  0x1c   :  { %v45_v12 = vshrl.u32 %v43_v10, 15  ;;  %v44_v13 = vmul.u32 2146121005, %v42_v11 }
  0x1e   :  { %v47_v14 = vxor.u32 %v45_v12, %v43_v10  ;;  %v46_v15 = vshrl.u32 %v44_v13, 15 }
  0x20   :  { %v49_v16 = vmul.u32 2221713035, %v47_v14  ;;  %v48_v17 = vxor.u32 %v46_v15, %v44_v13 }
  0x22   :  { %v51_v18 = vshrl.u32 %v49_v16, 16  ;;  %v50_v19 = vmul.u32 2221713035, %v48_v17 }
  0x24   :  { %v53_v20 = vxor.u32 %v51_v18, %v49_v16  ;;  %v52_v21 = vshrl.u32 %v50_v19, 16 }
  0x26   :  { %vm55_vm0 = vcmp.lt.u32.totalorder %v53_v20, 2147483648  ;;  %v54_v23 = vxor.u32 %v52_v21, %v50_v19 }
  0x27   :  { %v57_v25 = vsel %vm55_vm0, 2.0, %v134_v24 }
  0x28   :  { %v61_v27 = vmul.f32 %v59_v22, %v57_v25  ;;  %vm56_vm1 = vcmp.lt.u32.totalorder %v54_v23, 2147483648 }
  0x29   :  { %v58_v28 = vsel %vm56_vm1, 2.0, %v134_v24 }
  0x2a   :  { %63 = vst [vmem:[#allocation7] sm:$0xff] %v61_v27  ;;  %v62_v29 = vmul.f32 %v60_v26, %v58_v28 }
  0x2c   :  { %64 = vst [vmem:[#allocation7 + $0x8] sm:$0xff] %v62_v29 }
  0x2d   :  { %118 = shalt.err (!%p115_p9)
}
  0x2e   :  { %76 = dma.vmem_to_hbm [thread:$0]  %s71_s1, 256, %s168_s2, [#allocation6], %s132_s12, %s132_s12, %s133_s13  }
  0x2f   :  { %129 = dma.done.wait [#allocation6], 256  }
  0x30   :  { %130 = vsyncadd [#allocation6], 4294967040 }
  0x31   :  { %80 = vsyncpa [#allocation5], 1 }
  0x32   :  { %81 = vsyncpa [#allocation6], 1 }

</bundles_post_ra>
